<compile_context>
chip_gen: v7x
topology: tpu7x:2x2x1
jax: 0.10.0
libtpu: 0.0.40
codegen_flags: <defaults>
</compile_context>

<pallas_src>
import jax
import jax.numpy as jnp
from jax.experimental import pallas as pl
from jax.experimental.pallas import tpu as pltpu


def _round_up(n, m):
    return ((n + m - 1) // m) * m


def decoder_lstm_kernel(x_ref, h0_ref, c0_ref,
                        w_fused_ref, b_ref, w_lin_t_ref, b_lin_ref,
                        pred_ref, h_ref, c_ref):
    """One LSTM step (gate order i,f,g,o) + linear head, iterated over grid axis 0.

    x_ref        : [1, B, F_pad]     this step's (zero-padded) input, streamed per step
    h0_ref,c0_ref: [B, H]            initial state (read only at step 0)
    w_fused_ref  : [H + F_pad, 4H]   [W_hh.T ; W_ih.T (zero-padded rows)]
    b_ref        : [1, 4H]           b_ih + b_hh
    w_lin_t_ref  : [H, F_out_pad]    linear head, zero-padded to 128-lane multiple
    b_lin_ref    : [1, F_out_pad]
    pred_ref     : [1, B, F_out_pad] this step's (lane-dense) prediction
    h_ref, c_ref : [B, H]            VMEM-resident carried state (constant index map),
                                     aliased onto h0/c0 in HBM.
    """
    t = pl.program_id(0)

    @pl.when(t == 0)
    def _():
        h_ref[...] = h0_ref[...]
        c_ref[...] = c0_ref[...]

    x = x_ref[0]                 # [B, F_pad]  native dtype (MXU accumulates in f32)
    h = h_ref[...]               # [B, H]      f32 recurrent state
    c = c_ref[...]

    H = h_ref.shape[-1]
    w_dt = w_fused_ref.dtype

    # Single fused gate matmul: [h | x] @ [W_hh.T ; W_ih.T].  h comes first and x is
    # padded to a multiple of 128 lanes, so the concat is vreg-aligned (no XLU work)
    # and there is exactly one MXU pass for all four gates.
    hx = jnp.concatenate([h.astype(w_dt), x.astype(w_dt)], axis=-1)      # [B, H+F_pad]
    gates = (jnp.dot(hx, w_fused_ref[...], preferred_element_type=jnp.float32)
             + b_ref[...])                                               # [B, 4H] f32

    # With H a multiple of 128 (module default H=128) each gate slice is a whole-vreg
    # lane slice.  PyTorch gate order: i, f, g, o.  sigmoid/tanh go to the EUP slot.
    i_g = jax.nn.sigmoid(gates[:, 0 * H:1 * H])
    f_g = jax.nn.sigmoid(gates[:, 1 * H:2 * H])
    g_g = jnp.tanh(gates[:, 2 * H:3 * H])
    o_g = jax.nn.sigmoid(gates[:, 3 * H:4 * H])

    c_new = f_g * c + i_g * g_g
    h_new = o_g * jnp.tanh(c_new)

    # Lane-dense head: [B, H] @ [H, F_out_pad]; unmasked full-vreg stores.
    pred = (jnp.dot(h_new.astype(w_lin_t_ref.dtype), w_lin_t_ref[...],
                    preferred_element_type=jnp.float32)
            + b_lin_ref[...])

    pred_ref[0] = pred.astype(pred_ref.dtype)
    h_ref[...] = h_new.astype(h_ref.dtype)
    c_ref[...] = c_new.astype(c_ref.dtype)


def prepare_params(params, weight_dtype=None):
    """One-time weight prep (hoisted out of the per-token hot path).

    Builds the fused gate weight [H + F_pad, 4H] = [W_hh.T ; W_ih.T zero-padded to a
    128-aligned K offset], folds the biases, pre-transposes the linear head and pads
    its output axis to a 128-lane multiple (lane-dense stores).  Pass
    weight_dtype=jnp.bfloat16 on v6e/v7x for full-rate MXU and half the weight DMA
    (accumulation stays f32 inside the kernel).
    """
    w_hh_t = params["w_hh"].T                    # [H, 4H]
    w_ih_t = params["w_ih"].T                    # [F, 4H]
    H, G = w_hh_t.shape
    F = w_ih_t.shape[0]
    F_pad = _round_up(F, 128)
    w_ih_t_pad = jnp.zeros((F_pad, G), w_ih_t.dtype).at[:F].set(w_ih_t)
    w_fused = jnp.concatenate([w_hh_t, w_ih_t_pad], axis=0)              # [H+F_pad, 4H]
    b = (params["b_ih"] + params["b_hh"]).reshape(1, -1).astype(jnp.float32)

    w_lin_t = params["w_lin"].T                                          # [H, F_out]
    F_out = w_lin_t.shape[-1]
    F_out_pad = _round_up(F_out, 128)
    w_lin_t_pad = jnp.zeros((H, F_out_pad), w_lin_t.dtype).at[:, :F_out].set(w_lin_t)
    b_lin_pad = (jnp.zeros((1, F_out_pad), jnp.float32)
                 .at[0, :F_out].set(params["b_lin"].astype(jnp.float32)))

    if weight_dtype is not None:
        w_fused = w_fused.astype(weight_dtype)
        w_lin_t_pad = w_lin_t_pad.astype(weight_dtype)
    return {"w_fused": w_fused, "b": b, "w_lin_t": w_lin_t_pad, "b_lin": b_lin_pad}


def decoder_forward_steps(x_seq, hidden, cell, prepped):
    """Fused T-step decode: one pallas_call, weights VMEM-resident, h/c carried in VMEM.

    x_seq: [T, B, F]; hidden, cell: [1, B, H].
    Returns (predictions [T, B, F], hidden [1, B, H], cell [1, B, H]).
    (In this module output_size == LSTM input size, so F_out == F.)
    """
    T, B, F = x_seq.shape
    H = hidden.shape[-1]
    F_out = F                                    # tied by the module definition
    F_out_pad = prepped["w_lin_t"].shape[-1]
    K = prepped["w_fused"].shape[0]              # H + F_pad
    F_pad = K - H
    if F_pad != F:                               # pad x to the 128-aligned operand width
        x_seq = jnp.pad(x_seq, ((0, 0), (0, 0), (0, F_pad - F)))

    h0 = hidden[0]
    c0 = cell[0]

    grid_spec = pltpu.PrefetchScalarGridSpec(
        num_scalar_prefetch=0,
        grid=(T,),
        in_specs=[
            pl.BlockSpec((1, B, F_pad), lambda t: (t, 0, 0)),     # x_t: streamed per step
            pl.BlockSpec((B, H), lambda t: (0, 0)),               # h0: fetched once
            pl.BlockSpec((B, H), lambda t: (0, 0)),               # c0: fetched once
            pl.BlockSpec((K, 4 * H), lambda t: (0, 0)),           # fused gate weights: resident
            pl.BlockSpec((1, 4 * H), lambda t: (0, 0)),           # fused bias
            pl.BlockSpec((H, F_out_pad), lambda t: (0, 0)),       # linear head (lane-padded)
            pl.BlockSpec((1, F_out_pad), lambda t: (0, 0)),
        ],
        out_specs=(
            pl.BlockSpec((1, B, F_out_pad), lambda t: (t, 0, 0)),  # per-step prediction
            pl.BlockSpec((B, H), lambda t: (0, 0)),                # carried hidden state
            pl.BlockSpec((B, H), lambda t: (0, 0)),                # carried cell state
        ),
    )

    pred_pad, h_new, c_new = pl.pallas_call(
        decoder_lstm_kernel,
        grid_spec=grid_spec,
        out_shape=(
            jax.ShapeDtypeStruct((T, B, F_out_pad), x_seq.dtype),
            jax.ShapeDtypeStruct((B, H), h0.dtype),
            jax.ShapeDtypeStruct((B, H), c0.dtype),
        ),
        # Update hidden/cell in place (h0->h_out, c0->c_out): no extra HBM outputs.
        input_output_aliases={1: 1, 2: 2},
        compiler_params=pltpu.CompilerParams(
            dimension_semantics=("arbitrary",),        # recurrent carry -> sequential
            vmem_limit_bytes=32 * 1024 * 1024,         # explicit budget (v7x-safe)
        ),
    )(x_seq, h0, c0, prepped["w_fused"], prepped["b"],
      prepped["w_lin_t"], prepped["b_lin"])

    pred = pred_pad[..., :F_out]                 # drop lane padding (tiny slice)
    return pred, h_new[None, ...], c_new[None, ...]


def decoder_forward(x, hidden, cell, prepped):
    """Matches Decoder.forward: x [B, F] -> (prediction [1, B, F], hidden, cell)."""
    return decoder_forward_steps(x[None, ...], hidden, cell, prepped)


def decoder_reference(x, hidden, cell, params):
    """Pure-JAX reference matching torch.nn.LSTM (seq_len=1) + nn.Linear."""
    H = hidden.shape[-1]
    h, c = hidden[0], cell[0]
    gates = (x @ params["w_ih"].T + params["b_ih"]
             + h @ params["w_hh"].T + params["b_hh"])
    i_g = jax.nn.sigmoid(gates[:, 0 * H:1 * H])
    f_g = jax.nn.sigmoid(gates[:, 1 * H:2 * H])
    g_g = jnp.tanh(gates[:, 2 * H:3 * H])
    o_g = jax.nn.sigmoid(gates[:, 3 * H:4 * H])
    c_new = f_g * c + i_g * g_g
    h_new = o_g * jnp.tanh(c_new)
    pred = h_new @ params["w_lin"].T + params["b_lin"]
    return pred[None, ...], h_new[None, ...], c_new[None, ...]


def init_params(key, output_size, hidden_size):
    """Deterministic init matching nn.LSTM(output_size, hidden_size) + nn.Linear shapes."""
    k = 1.0 / jnp.sqrt(hidden_size)
    ks = jax.random.split(key, 6)
    u = lambda kk, shape: jax.random.uniform(kk, shape, jnp.float32, -k, k)
    return {
        "w_ih": u(ks[0], (4 * hidden_size, output_size)),
        "w_hh": u(ks[1], (4 * hidden_size, hidden_size)),
        "b_ih": u(ks[2], (4 * hidden_size,)),
        "b_hh": u(ks[3], (4 * hidden_size,)),
        "w_lin": u(ks[4], (output_size, hidden_size)),
        "b_lin": u(ks[5], (output_size,)),
    }


if __name__ == "__main__":
    B = 8       # batch
    OUT = 5     # output_size = LSTM input feature size = linear output size
    H = 128     # hidden_size (module default; multiple of 128 -> vreg-aligned gate slices)
    T = 4       # fused decode steps for the multi-step test

    key = jax.random.PRNGKey(0)
    kx, kxs, kh, kc, kp = jax.random.split(key, 5)

    x = jax.random.normal(kx, (B, OUT), jnp.float32)
    x_seq = jax.random.normal(kxs, (T, B, OUT), jnp.float32)
    hidden = jax.random.normal(kh, (1, B, H), jnp.float32)
    cell = jax.random.normal(kc, (1, B, H), jnp.float32)
    params = init_params(kp, OUT, H)

    prepped = prepare_params(params)            # one-time weight prep (hoisted glue)

    fwd = jax.jit(decoder_forward)
    fwd_steps = jax.jit(decoder_forward_steps)

    # --- single step: matches Decoder.forward exactly ---
    pred, h_new, c_new = fwd(x, hidden, cell, prepped)
    jax.block_until_ready((pred, h_new, c_new))

    pred_r, h_r, c_r = decoder_reference(x, hidden, cell, params)
    assert pred.shape == (1, B, OUT) and h_new.shape == (1, B, H) and c_new.shape == (1, B, H)
    assert jnp.allclose(pred, pred_r, atol=2e-4, rtol=2e-4)
    assert jnp.allclose(h_new, h_r, atol=2e-4, rtol=2e-4)
    assert jnp.allclose(c_new, c_r, atol=2e-4, rtol=2e-4)

    # --- fused T-step decode (weights resident, state carried in VMEM, h/c in place) ---
    preds, h_T, c_T = fwd_steps(x_seq, hidden, cell, prepped)
    jax.block_until_ready((preds, h_T, c_T))

    h_s, c_s = hidden, cell
    preds_ref = []
    for t in range(T):
        p_t, h_s, c_s = decoder_reference(x_seq[t], h_s, c_s, params)
        preds_ref.append(p_t[0])
    preds_ref = jnp.stack(preds_ref)
    assert preds.shape == (T, B, OUT)
    assert jnp.allclose(preds, preds_ref, atol=2e-4, rtol=2e-4)
    assert jnp.allclose(h_T, h_s, atol=2e-4, rtol=2e-4)
    assert jnp.allclose(c_T, c_s, atol=2e-4, rtol=2e-4)

    print("KERNEL_OK")
</pallas_src>

<mosaic_0001>
module attributes {stable_mosaic.version = 11 : i64} {
  func.func @decoder_lstm_kernel(%arg0: i32, %arg1: memref<1x8x128xf32, #tpu.memory_space<vmem>>, %arg2: memref<8x128xf32, #tpu.memory_space<vmem>>, %arg3: memref<8x128xf32, #tpu.memory_space<vmem>>, %arg4: memref<256x512xf32, #tpu.memory_space<vmem>>, %arg5: memref<1x512xf32, #tpu.memory_space<vmem>>, %arg6: memref<128x128xf32, #tpu.memory_space<vmem>>, %arg7: memref<1x128xf32, #tpu.memory_space<vmem>>, %arg8: memref<1x8x128xf32, #tpu.memory_space<vmem>>, %arg9: memref<8x128xf32, #tpu.memory_space<vmem>>, %arg10: memref<8x128xf32, #tpu.memory_space<vmem>>) attributes {dimension_semantics = [#tpu.dimension_semantics<arbitrary>], iteration_bounds = array<i64: 1>, scalar_prefetch = 0 : i64, scratch_operands = 0 : i64, tpu.core_type = #tpu.core_type<tc>, window_params = [{transform_indices = @transform_0, window_bounds = array<i64: 1, 8, 128>}, {pipeline_mode = #tpu.pipeline_mode<synchronous>, transform_indices = @transform_1, window_bounds = array<i64: 8, 128>}, {pipeline_mode = #tpu.pipeline_mode<synchronous>, transform_indices = @transform_2, window_bounds = array<i64: 8, 128>}, {pipeline_mode = #tpu.pipeline_mode<synchronous>, transform_indices = @transform_3, window_bounds = array<i64: 256, 512>}, {pipeline_mode = #tpu.pipeline_mode<synchronous>, transform_indices = @transform_4, window_bounds = array<i64: 1, 512>}, {pipeline_mode = #tpu.pipeline_mode<synchronous>, transform_indices = @transform_5, window_bounds = array<i64: 128, 128>}, {pipeline_mode = #tpu.pipeline_mode<synchronous>, transform_indices = @transform_6, window_bounds = array<i64: 1, 128>}, {transform_indices = @transform_7, window_bounds = array<i64: 1, 8, 128>}, {pipeline_mode = #tpu.pipeline_mode<synchronous>, transform_indices = @transform_8, window_bounds = array<i64: 8, 128>}, {pipeline_mode = #tpu.pipeline_mode<synchronous>, transform_indices = @transform_9, window_bounds = array<i64: 8, 128>}]} {
    %c0_i32 = arith.constant 0 : i32
    %0 = arith.cmpi eq, %arg0, %c0_i32 : i32
    %1 = arith.extui %0 : i1 to i32
    %c0_i32_0 = arith.constant 0 : i32
    %2 = arith.cmpi ne, %1, %c0_i32_0 : i32
    scf.if %2 {
      %c0_26 = arith.constant 0 : index
      %c0_27 = arith.constant 0 : index
      %48 = vector.load %arg2[%c0_26, %c0_27] : memref<8x128xf32, #tpu.memory_space<vmem>>, vector<8x128xf32>
      %c0_28 = arith.constant 0 : index
      %c0_29 = arith.constant 0 : index
      %49 = vector.load %arg9[%c0_28, %c0_29] : memref<8x128xf32, #tpu.memory_space<vmem>>, vector<8x128xf32>
      tpu.vector_store %arg9[%c0_28, %c0_29], %48 {strides = array<i32>} : memref<8x128xf32, #tpu.memory_space<vmem>>, vector<8x128xf32>,
      %c0_30 = arith.constant 0 : index
      %c0_31 = arith.constant 0 : index
      %50 = vector.load %arg3[%c0_30, %c0_31] : memref<8x128xf32, #tpu.memory_space<vmem>>, vector<8x128xf32>
      %c0_32 = arith.constant 0 : index
      %c0_33 = arith.constant 0 : index
      %51 = vector.load %arg10[%c0_32, %c0_33] : memref<8x128xf32, #tpu.memory_space<vmem>>, vector<8x128xf32>
      tpu.vector_store %arg10[%c0_32, %c0_33], %50 {strides = array<i32>} : memref<8x128xf32, #tpu.memory_space<vmem>>, vector<8x128xf32>,
    } else {
    }
    %c0 = arith.constant 0 : index
    %c0_1 = arith.constant 0 : index
    %c0_2 = arith.constant 0 : index
    %3 = vector.load %arg1[%c0, %c0_1, %c0_2] : memref<1x8x128xf32, #tpu.memory_space<vmem>>, vector<1x8x128xf32>
    %4 = vector.shape_cast %3 : vector<1x8x128xf32> to vector<8x128xf32>
    %c0_3 = arith.constant 0 : index
    %c0_4 = arith.constant 0 : index
    %5 = vector.load %arg9[%c0_3, %c0_4] : memref<8x128xf32, #tpu.memory_space<vmem>>, vector<8x128xf32>
    %c0_5 = arith.constant 0 : index
    %c0_6 = arith.constant 0 : index
    %6 = vector.load %arg10[%c0_5, %c0_6] : memref<8x128xf32, #tpu.memory_space<vmem>>, vector<8x128xf32>
    %7 = tpu.concatenate %5, %4 in 1 : vector<8x128xf32>, vector<8x128xf32> -> vector<8x256xf32>
    %c0_7 = arith.constant 0 : index
    %c0_8 = arith.constant 0 : index
    %8 = vector.load %arg4[%c0_7, %c0_8] : memref<256x512xf32, #tpu.memory_space<vmem>>, vector<256x512xf32>
    %cst = arith.constant dense<0.000000e+00> : vector<8x512xf32>
    %9 = tpu.matmul %7, %8, %cst {dimension_numbers = #tpu.dot_dimension_numbers<[1], [0], [0], [1], [0, 0, 1, 1], [], []>} : vector<8x256xf32>, vector<256x512xf32>, vector<8x512xf32> -> vector<8x512xf32>
    %c0_9 = arith.constant 0 : index
    %c0_10 = arith.constant 0 : index
    %10 = vector.load %arg5[%c0_9, %c0_10] : memref<1x512xf32, #tpu.memory_space<vmem>>, vector<1x512xf32>
    %11 = vector.broadcast %10 : vector<1x512xf32> to vector<8x512xf32>
    %12 = arith.addf %9, %11 : vector<8x512xf32>
    %13 = vector.extract_strided_slice %12 {offsets = [0, 0], sizes = [8, 128], strides = [1, 1]} : vector<8x512xf32> to vector<8x128xf32>
    %14 = arith.negf %13 : vector<8x128xf32>
    %15 = math.exp %14 : vector<8x128xf32>
    %cst_11 = arith.constant 1.000000e+00 : f32
    %16 = vector.broadcast %cst_11 : f32 to vector<8x128xf32>
    %17 = arith.addf %16, %15 : vector<8x128xf32>
    %18 = arith.divf %16, %17 : vector<8x128xf32>
    %19 = vector.extract_strided_slice %12 {offsets = [0, 128], sizes = [8, 128], strides = [1, 1]} : vector<8x512xf32> to vector<8x128xf32>
    %20 = arith.negf %19 : vector<8x128xf32>
    %21 = math.exp %20 : vector<8x128xf32>
    %cst_12 = arith.constant 1.000000e+00 : f32
    %22 = vector.broadcast %cst_12 : f32 to vector<8x128xf32>
    %23 = arith.addf %22, %21 : vector<8x128xf32>
    %24 = arith.divf %22, %23 : vector<8x128xf32>
    %25 = vector.extract_strided_slice %12 {offsets = [0, 256], sizes = [8, 128], strides = [1, 1]} : vector<8x512xf32> to vector<8x128xf32>
    %26 = math.tanh %25 : vector<8x128xf32>
    %27 = vector.extract_strided_slice %12 {offsets = [0, 384], sizes = [8, 128], strides = [1, 1]} : vector<8x512xf32> to vector<8x128xf32>
    %28 = arith.negf %27 : vector<8x128xf32>
    %29 = math.exp %28 : vector<8x128xf32>
    %cst_13 = arith.constant 1.000000e+00 : f32
    %30 = vector.broadcast %cst_13 : f32 to vector<8x128xf32>
    %31 = arith.addf %30, %29 : vector<8x128xf32>
    %32 = arith.divf %30, %31 : vector<8x128xf32>
    %33 = arith.mulf %24, %6 : vector<8x128xf32>
    %34 = arith.mulf %18, %26 : vector<8x128xf32>
    %35 = arith.addf %33, %34 : vector<8x128xf32>
    %36 = math.tanh %35 : vector<8x128xf32>
    %37 = arith.mulf %32, %36 : vector<8x128xf32>
    %c0_14 = arith.constant 0 : index
    %c0_15 = arith.constant 0 : index
    %38 = vector.load %arg6[%c0_14, %c0_15] : memref<128x128xf32, #tpu.memory_space<vmem>>, vector<128x128xf32>
    %cst_16 = arith.constant dense<0.000000e+00> : vector<8x128xf32>
    %39 = tpu.matmul %37, %38, %cst_16 {dimension_numbers = #tpu.dot_dimension_numbers<[1], [0], [0], [1], [0, 0, 1, 1], [], []>} : vector<8x128xf32>, vector<128x128xf32>, vector<8x128xf32> -> vector<8x128xf32>
    %c0_17 = arith.constant 0 : index
    %c0_18 = arith.constant 0 : index
    %40 = vector.load %arg7[%c0_17, %c0_18] : memref<1x128xf32, #tpu.memory_space<vmem>>, vector<1x128xf32>
    %41 = vector.broadcast %40 : vector<1x128xf32> to vector<8x128xf32>
    %42 = arith.addf %39, %41 : vector<8x128xf32>
    %c0_19 = arith.constant 0 : index
    %c0_20 = arith.constant 0 : index
    %c0_21 = arith.constant 0 : index
    %43 = vector.load %arg8[%c0_19, %c0_20, %c0_21] : memref<1x8x128xf32, #tpu.memory_space<vmem>>, vector<1x8x128xf32>
    %44 = vector.shape_cast %43 : vector<1x8x128xf32> to vector<8x128xf32>
    %45 = vector.shape_cast %42 : vector<8x128xf32> to vector<1x8x128xf32>
    tpu.vector_store %arg8[%c0_19, %c0_20, %c0_21], %45 {strides = array<i32>} : memref<1x8x128xf32, #tpu.memory_space<vmem>>, vector<1x8x128xf32>,
    %c0_22 = arith.constant 0 : index
    %c0_23 = arith.constant 0 : index
    %46 = vector.load %arg9[%c0_22, %c0_23] : memref<8x128xf32, #tpu.memory_space<vmem>>, vector<8x128xf32>
    tpu.vector_store %arg9[%c0_22, %c0_23], %37 {strides = array<i32>} : memref<8x128xf32, #tpu.memory_space<vmem>>, vector<8x128xf32>,
    %c0_24 = arith.constant 0 : index
    %c0_25 = arith.constant 0 : index
    %47 = vector.load %arg10[%c0_24, %c0_25] : memref<8x128xf32, #tpu.memory_space<vmem>>, vector<8x128xf32>
    tpu.vector_store %arg10[%c0_24, %c0_25], %35 {strides = array<i32>} : memref<8x128xf32, #tpu.memory_space<vmem>>, vector<8x128xf32>,
    return
  }
  func.func @transform_0(%arg0: i32) -> (i32, i32, i32) {
    %c0_i32 = arith.constant 0 : i32
    %c0_i32_0 = arith.constant 0 : i32
    %c0_i32_1 = arith.constant 0 : i32
    return %arg0, %c0_i32, %c0_i32_0 : i32, i32, i32
  }
  func.func @transform_1(%arg0: i32) -> (i32, i32) {
    %c0_i32 = arith.constant 0 : i32
    %c0_i32_0 = arith.constant 0 : i32
    %c0_i32_1 = arith.constant 0 : i32
    return %c0_i32, %c0_i32_0 : i32, i32
  }
  func.func @transform_2(%arg0: i32) -> (i32, i32) {
    %c0_i32 = arith.constant 0 : i32
    %c0_i32_0 = arith.constant 0 : i32
    %c0_i32_1 = arith.constant 0 : i32
    return %c0_i32, %c0_i32_0 : i32, i32
  }
  func.func @transform_3(%arg0: i32) -> (i32, i32) {
    %c0_i32 = arith.constant 0 : i32
    %c0_i32_0 = arith.constant 0 : i32
    %c0_i32_1 = arith.constant 0 : i32
    return %c0_i32, %c0_i32_0 : i32, i32
  }
  func.func @transform_4(%arg0: i32) -> (i32, i32) {
    %c0_i32 = arith.constant 0 : i32
    %c0_i32_0 = arith.constant 0 : i32
    %c0_i32_1 = arith.constant 0 : i32
    return %c0_i32, %c0_i32_0 : i32, i32
  }
  func.func @transform_5(%arg0: i32) -> (i32, i32) {
    %c0_i32 = arith.constant 0 : i32
    %c0_i32_0 = arith.constant 0 : i32
    %c0_i32_1 = arith.constant 0 : i32
    return %c0_i32, %c0_i32_0 : i32, i32
  }
  func.func @transform_6(%arg0: i32) -> (i32, i32) {
    %c0_i32 = arith.constant 0 : i32
    %c0_i32_0 = arith.constant 0 : i32
    %c0_i32_1 = arith.constant 0 : i32
    return %c0_i32, %c0_i32_0 : i32, i32
  }
  func.func @transform_7(%arg0: i32) -> (i32, i32, i32) {
    %c0_i32 = arith.constant 0 : i32
    %c0_i32_0 = arith.constant 0 : i32
    %c0_i32_1 = arith.constant 0 : i32
    return %arg0, %c0_i32, %c0_i32_0 : i32, i32, i32
  }
  func.func @transform_8(%arg0: i32) -> (i32, i32) {
    %c0_i32 = arith.constant 0 : i32
    %c0_i32_0 = arith.constant 0 : i32
    %c0_i32_1 = arith.constant 0 : i32
    return %c0_i32, %c0_i32_0 : i32, i32
  }
  func.func @transform_9(%arg0: i32) -> (i32, i32) {
    %c0_i32 = arith.constant 0 : i32
    %c0_i32_0 = arith.constant 0 : i32
    %c0_i32_1 = arith.constant 0 : i32
    return %c0_i32, %c0_i32_0 : i32, i32
  }
}

</mosaic_0001>

<bundles_post_ra>
// kernel: decoder_forward.1
= control target key start
LH: loop header
LB: loop body
LE: loop exit
PB: predicated region body
PF: predicated region fallthrough
CT: control target
= control target key end

     0   :  { %15 = vsyncpa [#allocation3], 0  ;;  %s882_s0 = inlined_call_operand.vmem [shape: f32[1,8,128], index: 0, kind: input, shape index: {}]   ;;  %s883_s1 = inlined_call_operand.vmem [shape: f32[8,128], index: 1, kind: input, shape index: {}, may-alias: {1,8}]   ;;  %s884_s2 = inlined_call_operand.vmem [shape: f32[8,128], index: 2, kind: input, shape index: {}, may-alias: {2,9}]   ;;  %s885_s3 = inlined_call_operand.hbm [shape: f32[256,512], index: 3, kind: input, shape index: {}]   ;;  %s886_s4 = inlined_call_operand.vmem [shape: f32[1,512], index: 4, kind: input, shape index: {}]   ;;  %s887_s5 = inlined_call_operand.hbm [shape: f32[128,128], index: 5, kind: input, shape index: {}]   ;;  %s888_s6 = inlined_call_operand.vmem [shape: f32[1,128], index: 6, kind: input, shape index: {}]   ;;  %s889_s7 = inlined_call_operand.vmem [shape: f32[1,8,128], index: 7, kind: output, shape index: {0}]   ;;  %s890_s8 = inlined_call_operand.vmem [shape: f32[8,128], index: 8, kind: output, shape index: {1}, may-alias: {1,8}]   ;;  %s891_s9 = inlined_call_operand.vmem [shape: f32[8,128], index: 9, kind: output, shape index: {2}, may-alias: {2,9}]  }
   0x1   :  { %16 = vsyncpa [#allocation5], 0  ;;  %s775_s30 = smov [#allocation2]   ;;  %s727_s13 = scalar_lea.hbm %s885_s3, 16384 }
   0x2   :  { %s28_s10 = sshll.u32 %s775_s30, 4  ;;  %p728_p0 = scmp.ne.s32.totalorder %s885_s3, %s727_s13  ;;  %s29_s10 = int_to_ptr.vmem [resolvable:$true] %s28_s10 }
   0x3   :  { %p731_p1 = scmp.lt.u32.totalorder %s727_s13, %s885_s3 }
   0x5   :  { %p733_p2 = pnand %p731_p1, %p728_p0 }
   0x7   :  { %736 = shalt.err (!%p733_p2)
}
   0x8   :  { %s737_s18 = scalar_lea.vmem %s29_s10, 16384  ;;  %p742_p4 = scmp.lt.s32.totalorder %s29_s10, %s29_s10 }
   0x9   :  { %p738_p3 = scmp.ne.s32.totalorder %s29_s10, %s737_s18  ;;  %p743_p5 = scmp.lt.s32.totalorder %s737_s18, %s737_s18 }
   0xb   :  { %p744_p6 = por %p743_p5, %p742_p4 }
   0xd   :  { %p745_p7 = pnand %p744_p6, %p738_p3 }
   0xf   :  { %748 = shalt.err (!%p745_p7)
}
  0x10   :  { %s776_s19 = smov 512   ;;  %s777_s20 = smov 32  }
  0x11   :  { %34 = dma.hbm_to_vmem [thread:$0]  %s885_s3, 16384, %s29_s10, [#allocation3], %s776_s19, %s776_s19, %s777_s20  }
  0x12   :  { %s778_s23 = smov [#allocation4]   ;;  %s749_s27 = scalar_lea.hbm %s887_s5, 2048 }
  0x13   :  { %s42_s24 = sshll.u32 %s778_s23, 4  ;;  %p750_p8 = scmp.ne.s32.totalorder %s887_s5, %s749_s27  ;;  %s43_s24 = int_to_ptr.vmem [resolvable:$true] %s42_s24 }
  0x14   :  { %p753_p9 = scmp.lt.u32.totalorder %s749_s27, %s887_s5 }
  0x16   :  { %p755_p10 = pnand %p753_p9, %p750_p8 }
  0x18   :  { %758 = shalt.err (!%p755_p10)
}
  0x19   :  { %s759_s12 = scalar_lea.vmem %s43_s24, 2048  ;;  %p764_p12 = scmp.lt.s32.totalorder %s43_s24, %s43_s24 }
  0x1a   :  { %p760_p11 = scmp.ne.s32.totalorder %s43_s24, %s759_s12  ;;  %p765_p13 = scmp.lt.s32.totalorder %s759_s12, %s759_s12 }
  0x1c   :  { %p766_p0 = por %p765_p13, %p764_p12 }
  0x1e   :  { %p767_p1 = pnand %p766_p0, %p760_p11 }
  0x20   :  { %770 = shalt.err (!%p767_p1)
}
  0x21   :  { %s779_s3 = smov 128   ;;  %s780_s10 = smov 8  }
  0x22   :  { %48 = dma.hbm_to_vmem [thread:$0]  %s887_s5, 2048, %s43_s24, [#allocation5], %s779_s3, %s779_s3, %s780_s10  }
  0x23   :  { %771 = dma.done.wait [#allocation3], 16384  }
  0x24   :  { %772 = vsyncadd [#allocation3], 4294950912 }
  0x25   :  { %773 = dma.done.wait [#allocation5], 2048  }
  0x26   :  { %774 = vsyncadd [#allocation5], 4294965248  ;;  %v69_v0 = vld [vmem:[#allocation2 + $0x8] sm:$0xff]  ;;  %v68_v2 = vld [vmem:[#allocation2] sm:$0xff]  ;;  %vm782_vm0 = vmmov 0  }
  0x27   :  { %v73_v1 = vld [vmem:[#allocation2 + $0x28] sm:$0xff]  ;;  %v72_v4 = vld [vmem:[#allocation2 + $0x20] sm:$0xff]  ;;  %v71_v18 = vld [vmem:[#allocation2 + $0x18] sm:$0xff] }
  0x28   :  { %v550_v3 = vpack.c.bf16 %v73_v1, %v69_v0  ;;  %v77_v5 = vld [vmem:[#allocation2 + $0x48] sm:$0xff]  ;;  %v552_v7 = vpack.c.bf16 %v72_v4, %v68_v2  ;;  %v76_v9 = vld [vmem:[#allocation2 + $0x40] sm:$0xff]  ;;  %v75_v19 = vld [vmem:[#allocation2 + $0x38] sm:$0xff] }
  0x29   :  { %v81_v6 = vld [vmem:[#allocation2 + $0x68] sm:$0xff]  ;;  %v80_v10 = vld [vmem:[#allocation2 + $0x60] sm:$0xff]  ;;  %v614_v21 = vpack.c.bf16 %v75_v19, %v71_v18  ;;  %v70_v22 = vld [vmem:[#allocation2 + $0x10] sm:$0xff] }
  0x2a   :  { %v554_v8 = vpack.c.bf16 %v81_v6, %v77_v5  ;;  %v85_v11 = vld [vmem:[#allocation2 + $0x88] sm:$0xff]  ;;  %551 = vmatprep.subr.bf16.mxu0 %v550_v3  ;;  %v556_v13 = vpack.c.bf16 %v80_v10, %v76_v9  ;;  %v84_v14 = vld [vmem:[#allocation2 + $0x80] sm:$0xff]  ;;  %v74_v23 = vld [vmem:[#allocation2 + $0x30] sm:$0xff] }
  0x2b   :  { %v89_v12 = vld [vmem:[#allocation2 + $0xa8] sm:$0xff]  ;;  %553 = vmatpush1.bf16.msra.mxu0 %v552_v7  ;;  %v88_v15 = vld [vmem:[#allocation2 + $0xa0] sm:$0xff]  ;;  %v616_v24 = vpack.c.bf16 %v74_v23, %v70_v22  ;;  %615 = vmatprep.subr.bf16.mxu1 %v614_v21  ;;  %v79_v26 = vld [vmem:[#allocation2 + $0x58] sm:$0xff] }
  0x2c   :  { %555 = vmatprep.subr.bf16.mxu0 %v554_v8  ;;  %v558_v16 = vpack.c.bf16 %v89_v12, %v85_v11  ;;  %v93_v17 = vld [vmem:[#allocation2 + $0xc8] sm:$0xff]  ;;  %v560_v25 = vpack.c.bf16 %v88_v15, %v84_v14  ;;  %v83_v27 = vld [vmem:[#allocation2 + $0x78] sm:$0xff]  ;;  %v78_v28 = vld [vmem:[#allocation2 + $0x50] sm:$0xff] }
  0x2d   :  { %v97_v20 = vld [vmem:[#allocation2 + $0xe8] sm:$0xff]  ;;  %v92_v30 = vld [vmem:[#allocation2 + $0xc0] sm:$0xff]  ;;  %617 = vmatpush1.bf16.msra.mxu1 %v616_v24  ;;  %v618_v32 = vpack.c.bf16 %v83_v27, %v79_v26  ;;  %v82_v33 = vld [vmem:[#allocation2 + $0x70] sm:$0xff] }
  0x2e   :  { %v562_v29 = vpack.c.bf16 %v97_v20, %v93_v17  ;;  %v96_v31 = vld [vmem:[#allocation2 + $0xe0] sm:$0xff]  ;;  %v101_v34 = vld [vmem:[#allocation2 + $0x108] sm:$0xff]  ;;  %v620_v36 = vpack.c.bf16 %v82_v33, %v78_v28  ;;  %v87_v37 = vld [vmem:[#allocation2 + $0x98] sm:$0xff] }
  0x2f   :  { %557 = vmatpush1.bf16.msra.mxu0 %v556_v13  ;;  %v105_v35 = vld [vmem:[#allocation2 + $0x128] sm:$0xff]  ;;  %619 = vmatprep.subr.bf16.mxu1 %v618_v32  ;;  %v91_v38 = vld [vmem:[#allocation2 + $0xb8] sm:$0xff]  ;;  %v86_v39 = vld [vmem:[#allocation2 + $0x90] sm:$0xff]  ;;  %v564_v41 = vpack.c.bf16 %v96_v31, %v92_v30 }
  0x30   :  { %559 = vmatprep.subr.bf16.mxu0 %v558_v16  ;;  %v90_v40 = vld [vmem:[#allocation2 + $0xb0] sm:$0xff]  ;;  %v100_v42 = vld [vmem:[#allocation2 + $0x100] sm:$0xff]  ;;  %v622_v44 = vpack.c.bf16 %v91_v38, %v87_v37  ;;  %v566_v45 = vpack.c.bf16 %v105_v35, %v101_v34  ;;  %v109_v46 = vld [vmem:[#allocation2 + $0x148] sm:$0xff] }
  0x31   :  { %v104_v43 = vld [vmem:[#allocation2 + $0x120] sm:$0xff]  ;;  %621 = vmatpush1.bf16.msra.mxu1 %v620_v36  ;;  %v624_v47 = vpack.c.bf16 %v90_v40, %v86_v39  ;;  %v95_v48 = vld [vmem:[#allocation2 + $0xd8] sm:$0xff]  ;;  %v113_v50 = vld [vmem:[#allocation2 + $0x168] sm:$0xff] }
  0x32   :  { %v99_v49 = vld [vmem:[#allocation2 + $0xf8] sm:$0xff]  ;;  %623 = vmatprep.subr.bf16.mxu1 %v622_v44  ;;  %v94_v52 = vld [vmem:[#allocation2 + $0xd0] sm:$0xff]  ;;  %v568_v54 = vpack.c.bf16 %v104_v43, %v100_v42  ;;  %v570_v57 = vpack.c.bf16 %v113_v50, %v109_v46  ;;  %v108_v58 = vld [vmem:[#allocation2 + $0x140] sm:$0xff] }
  0x33   :  { %561 = vmatpush1.bf16.msra.mxu0 %v560_v25  ;;  %v626_v51 = vpack.c.bf16 %v99_v49, %v95_v48  ;;  %v98_v53 = vld [vmem:[#allocation2 + $0xf0] sm:$0xff]  ;;  %v103_v55 = vld [vmem:[#allocation2 + $0x118] sm:$0xff]  ;;  %v112_v59 = vld [vmem:[#allocation2 + $0x160] sm:$0xff] }
  0x34   :  { %563 = vmatprep.subr.bf16.mxu0 %v562_v29  ;;  %v107_v56 = vld [vmem:[#allocation2 + $0x138] sm:$0xff]  ;;  %v117_v60 = vld [vmem:[#allocation2 + $0x188] sm:$0xff]  ;;  %v628_v61 = vpack.c.bf16 %v98_v53, %v94_v52  ;;  %v102_v0 = vld [vmem:[#allocation2 + $0x110] sm:$0xff]  ;;  %v572_v4 = vpack.c.bf16 %v112_v59, %v108_v58 }
  0x35   :  { %625 = vmatpush1.bf16.msra.mxu1 %v624_v47  ;;  %v121_v62 = vld [vmem:[#allocation2 + $0x1a8] sm:$0xff]  ;;  %v630_v63 = vpack.c.bf16 %v107_v56, %v103_v55  ;;  %v106_v1 = vld [vmem:[#allocation2 + $0x130] sm:$0xff]  ;;  %v111_v2 = vld [vmem:[#allocation2 + $0x158] sm:$0xff] }
  0x36   :  { %627 = vmatprep.subr.bf16.mxu1 %v626_v51  ;;  %v115_v3 = vld [vmem:[#allocation2 + $0x178] sm:$0xff]  ;;  %v574_v5 = vpack.c.bf16 %v121_v62, %v117_v60  ;;  %v116_v6 = vld [vmem:[#allocation2 + $0x180] sm:$0xff]  ;;  %v125_v8 = vld [vmem:[#allocation2 + $0x1c8] sm:$0xff]  ;;  %v632_v9 = vpack.c.bf16 %v106_v1, %v102_v0 }
  0x37   :  { %565 = vmatpush1.bf16.msra.mxu0 %v564_v41  ;;  %v120_v7 = vld [vmem:[#allocation2 + $0x1a0] sm:$0xff]  ;;  %v129_v10 = vld [vmem:[#allocation2 + $0x1e8] sm:$0xff]  ;;  %v634_v11 = vpack.c.bf16 %v115_v3, %v111_v2  ;;  %v110_v12 = vld [vmem:[#allocation2 + $0x150] sm:$0xff] }
  0x38   :  { %567 = vmatprep.subr.bf16.mxu0 %v566_v45  ;;  %v114_v13 = vld [vmem:[#allocation2 + $0x170] sm:$0xff]  ;;  %v119_v14 = vld [vmem:[#allocation2 + $0x198] sm:$0xff]  ;;  %v576_v16 = vpack.c.bf16 %v120_v7, %v116_v6  ;;  %v578_v17 = vpack.c.bf16 %v129_v10, %v125_v8  ;;  %v124_v18 = vld [vmem:[#allocation2 + $0x1c0] sm:$0xff] }
  0x39   :  { %629 = vmatpush1.bf16.msra.mxu1 %v628_v61  ;;  %v123_v15 = vld [vmem:[#allocation2 + $0x1b8] sm:$0xff]  ;;  %v128_v19 = vld [vmem:[#allocation2 + $0x1e0] sm:$0xff]  ;;  %v133_v20 = vld [vmem:[#allocation2 + $0x208] sm:$0xff]  ;;  %v636_v21 = vpack.c.bf16 %v114_v13, %v110_v12 }
  0x3a   :  { %631 = vmatprep.subr.bf16.mxu1 %v630_v63  ;;  %v137_v22 = vld [vmem:[#allocation2 + $0x228] sm:$0xff]  ;;  %v638_v23 = vpack.c.bf16 %v123_v15, %v119_v14  ;;  %v118_v24 = vld [vmem:[#allocation2 + $0x190] sm:$0xff]  ;;  %v127_v26 = vld [vmem:[#allocation2 + $0x1d8] sm:$0xff]  ;;  %v580_v28 = vpack.c.bf16 %v128_v19, %v124_v18 }
  0x3b   :  { %569 = vmatpush1.bf16.msra.mxu0 %v568_v54  ;;  %v122_v25 = vld [vmem:[#allocation2 + $0x1b0] sm:$0xff]  ;;  %v131_v27 = vld [vmem:[#allocation2 + $0x1f8] sm:$0xff]  ;;  %v582_v29 = vpack.c.bf16 %v137_v22, %v133_v20  ;;  %v132_v30 = vld [vmem:[#allocation2 + $0x200] sm:$0xff] }
  0x3c   :  { %571 = vmatprep.subr.bf16.mxu0 %v570_v57  ;;  %v136_v31 = vld [vmem:[#allocation2 + $0x220] sm:$0xff]  ;;  %v141_v32 = vld [vmem:[#allocation2 + $0x248] sm:$0xff]  ;;  %v640_v33 = vpack.c.bf16 %v122_v25, %v118_v24  ;;  %v642_v35 = vpack.c.bf16 %v131_v27, %v127_v26  ;;  %v126_v36 = vld [vmem:[#allocation2 + $0x1d0] sm:$0xff] }
  0x3d   :  { %633 = vmatpush1.bf16.msra.mxu1 %v632_v9  ;;  %v145_v34 = vld [vmem:[#allocation2 + $0x268] sm:$0xff]  ;;  %v130_v37 = vld [vmem:[#allocation2 + $0x1f0] sm:$0xff]  ;;  %v135_v38 = vld [vmem:[#allocation2 + $0x218] sm:$0xff]  ;;  %v584_v40 = vpack.c.bf16 %v136_v31, %v132_v30 }
  0x3e   :  { %635 = vmatprep.subr.bf16.mxu1 %v634_v11  ;;  %v139_v39 = vld [vmem:[#allocation2 + $0x238] sm:$0xff]  ;;  %v586_v41 = vpack.c.bf16 %v145_v34, %v141_v32  ;;  %v140_v42 = vld [vmem:[#allocation2 + $0x240] sm:$0xff]  ;;  %v149_v44 = vld [vmem:[#allocation2 + $0x288] sm:$0xff]  ;;  %v644_v45 = vpack.c.bf16 %v130_v37, %v126_v36 }
  0x3f   :  { %573 = vmatpush1.bf16.msra.mxu0 %v572_v4  ;;  %v144_v43 = vld [vmem:[#allocation2 + $0x260] sm:$0xff]  ;;  %v153_v46 = vld [vmem:[#allocation2 + $0x2a8] sm:$0xff]  ;;  %v646_v47 = vpack.c.bf16 %v139_v39, %v135_v38  ;;  %v134_v48 = vld [vmem:[#allocation2 + $0x210] sm:$0xff] }
  0x40   :  { %575 = vmatprep.subr.bf16.mxu0 %v574_v5  ;;  %v138_v49 = vld [vmem:[#allocation2 + $0x230] sm:$0xff]  ;;  %v143_v50 = vld [vmem:[#allocation2 + $0x258] sm:$0xff]  ;;  %v588_v52 = vpack.c.bf16 %v144_v43, %v140_v42  ;;  %v148_v53 = vld [vmem:[#allocation2 + $0x280] sm:$0xff]  ;;  %v590_v54 = vpack.c.bf16 %v153_v46, %v149_v44 }
  0x41   :  { %637 = vmatpush1.bf16.msra.mxu1 %v636_v21  ;;  %v147_v51 = vld [vmem:[#allocation2 + $0x278] sm:$0xff]  ;;  %v152_v55 = vld [vmem:[#allocation2 + $0x2a0] sm:$0xff]  ;;  %v157_v56 = vld [vmem:[#allocation2 + $0x2c8] sm:$0xff]  ;;  %v648_v58 = vpack.c.bf16 %v138_v49, %v134_v48 }
  0x42   :  { %639 = vmatprep.subr.bf16.mxu1 %v638_v23  ;;  %v161_v57 = vld [vmem:[#allocation2 + $0x2e8] sm:$0xff]  ;;  %v650_v59 = vpack.c.bf16 %v147_v51, %v143_v50  ;;  %v142_v60 = vld [vmem:[#allocation2 + $0x250] sm:$0xff]  ;;  %v65_v62 = vld [vmem:[%s882_s0] sm:$0xff]  ;;  %v592_v1 = vpack.c.bf16 %v152_v55, %v148_v53 }
  0x43   :  { %577 = vmatpush1.bf16.msra.mxu0 %v576_v16  ;;  %v146_v61 = vld [vmem:[#allocation2 + $0x270] sm:$0xff]  ;;  %v151_v63 = vld [vmem:[#allocation2 + $0x298] sm:$0xff]  ;;  %282 = vmatprep.mubr.f32.mxu0 %v65_v62  ;;  %v594_v2 = vpack.c.bf16 %v161_v57, %v157_v56  ;;  %v156_v3 = vld [vmem:[#allocation2 + $0x2c0] sm:$0xff] }
  0x44   :  { %579 = vmatprep.subr.bf16.mxu0 %v578_v17  ;;  %v155_v0 = vld [vmem:[#allocation2 + $0x2b8] sm:$0xff]  ;;  %353 = vmatprep.mubr.f32.mxu1 %v65_v62  ;;  %v160_v4 = vld [vmem:[#allocation2 + $0x2e0] sm:$0xff]  ;;  %v165_v5 = vld [vmem:[#allocation2 + $0x308] sm:$0xff]  ;;  %v652_v6 = vpack.c.bf16 %v146_v61, %v142_v60 }
  0x45   :  { %641 = vmatpush1.bf16.msra.mxu1 %v640_v33  ;;  %v169_v7 = vld [vmem:[#allocation2 + $0x328] sm:$0xff]  ;;  %v654_v8 = vpack.c.bf16 %v155_v0, %v151_v63  ;;  %v150_v9 = vld [vmem:[#allocation2 + $0x290] sm:$0xff]  ;;  %v159_v11 = vld [vmem:[#allocation2 + $0x2d8] sm:$0xff]  ;;  %v596_v13 = vpack.c.bf16 %v160_v4, %v156_v3 }
  0x46   :  { %643 = vmatprep.subr.bf16.mxu1 %v642_v35  ;;  %v154_v10 = vld [vmem:[#allocation2 + $0x2b0] sm:$0xff]  ;;  %v163_v12 = vld [vmem:[#allocation2 + $0x2f8] sm:$0xff]  ;;  %v598_v14 = vpack.c.bf16 %v169_v7, %v165_v5  ;;  %v164_v15 = vld [vmem:[#allocation2 + $0x300] sm:$0xff]  ;;  %v781_v5 = vmov 0.0|0.0  }
  0x47   :  { %581 = vmatpush1.bf16.msra.mxu0 %v580_v28  ;;  %v168_v16 = vld [vmem:[#allocation2 + $0x320] sm:$0xff]  ;;  %v173_v17 = vld [vmem:[#allocation2 + $0x348] sm:$0xff]  ;;  %v656_v18 = vpack.c.bf16 %v154_v10, %v150_v9  ;;  %v658_v20 = vpack.c.bf16 %v163_v12, %v159_v11  ;;  %v158_v21 = vld [vmem:[#allocation2 + $0x2d0] sm:$0xff] }
  0x48   :  { %583 = vmatprep.subr.bf16.mxu0 %v582_v29  ;;  %v177_v19 = vld [vmem:[#allocation2 + $0x368] sm:$0xff]  ;;  %v162_v22 = vld [vmem:[#allocation2 + $0x2f0] sm:$0xff]  ;;  %v167_v23 = vld [vmem:[#allocation2 + $0x318] sm:$0xff]  ;;  %v600_v25 = vpack.c.bf16 %v168_v16, %v164_v15 }
  0x49   :  { %645 = vmatpush1.bf16.msra.mxu1 %v644_v45  ;;  %v171_v24 = vld [vmem:[#allocation2 + $0x338] sm:$0xff]  ;;  %v602_v26 = vpack.c.bf16 %v177_v19, %v173_v17  ;;  %v172_v27 = vld [vmem:[#allocation2 + $0x340] sm:$0xff]  ;;  %v181_v29 = vld [vmem:[#allocation2 + $0x388] sm:$0xff]  ;;  %v660_v30 = vpack.c.bf16 %v162_v22, %v158_v21 }
  0x4a   :  { %647 = vmatprep.subr.bf16.mxu1 %v646_v47  ;;  %v176_v28 = vld [vmem:[#allocation2 + $0x360] sm:$0xff]  ;;  %v185_v31 = vld [vmem:[#allocation2 + $0x3a8] sm:$0xff]  ;;  %v662_v32 = vpack.c.bf16 %v171_v24, %v167_v23  ;;  %v166_v33 = vld [vmem:[#allocation2 + $0x310] sm:$0xff]  ;;  %v783_v23 = vmov 0.0  }
  0x4b   :  { %585 = vmatpush1.bf16.msra.mxu0 %v584_v40  ;;  %v170_v34 = vld [vmem:[#allocation2 + $0x330] sm:$0xff]  ;;  %v175_v35 = vld [vmem:[#allocation2 + $0x358] sm:$0xff]  ;;  %v604_v37 = vpack.c.bf16 %v176_v28, %v172_v27  ;;  %v606_v38 = vpack.c.bf16 %v185_v31, %v181_v29  ;;  %v180_v39 = vld [vmem:[#allocation2 + $0x380] sm:$0xff]  ;;  %v198_v28 = vlaneseq }
  0x4c   :  { %587 = vmatprep.subr.bf16.mxu0 %v586_v41  ;;  %v179_v36 = vld [vmem:[#allocation2 + $0x378] sm:$0xff]  ;;  %v184_v40 = vld [vmem:[#allocation2 + $0x3a0] sm:$0xff]  ;;  %v189_v41 = vld [vmem:[#allocation2 + $0x3c8] sm:$0xff]  ;;  %v664_v42 = vpack.c.bf16 %v170_v34, %v166_v33 }
  0x4d   :  { %649 = vmatpush1.bf16.msra.mxu1 %v648_v58  ;;  %v193_v43 = vld [vmem:[#allocation2 + $0x3e8] sm:$0xff]  ;;  %v666_v44 = vpack.c.bf16 %v179_v36, %v175_v35  ;;  %v174_v45 = vld [vmem:[#allocation2 + $0x350] sm:$0xff]  ;;  %v183_v47 = vld [vmem:[#allocation2 + $0x398] sm:$0xff]  ;;  %v608_v49 = vpack.c.bf16 %v184_v40, %v180_v39  ;;  %v199_v29 = vshrl.u32 %v198_v28, 7 }
  0x4e   :  { %651 = vmatprep.subr.bf16.mxu1 %v650_v59  ;;  %v178_v46 = vld [vmem:[#allocation2 + $0x370] sm:$0xff]  ;;  %v187_v48 = vld [vmem:[#allocation2 + $0x3b8] sm:$0xff]  ;;  %v610_v50 = vpack.c.bf16 %v193_v43, %v189_v41  ;;  %v188_v51 = vld [vmem:[#allocation2 + $0x3c0] sm:$0xff] }
  0x4f   :  { %589 = vmatpush1.bf16.msra.mxu0 %v588_v52  ;;  %v192_v52 = vld [vmem:[#allocation2 + $0x3e0] sm:$0xff]  ;;  %v668_v53 = vpack.c.bf16 %v178_v46, %v174_v45  ;;  %v182_v55 = vld [vmem:[#allocation2 + $0x390] sm:$0xff]  ;;  %v191_v57 = vld [vmem:[#allocation2 + $0x3d8] sm:$0xff]  ;;  %v212_v35 = vsub.s32 3, %v199_v29  ;;  %v208_v43 = vsub.s32 2, %v199_v29 }
  0x50   :  { %591 = vmatprep.subr.bf16.mxu0 %v590_v54  ;;  %v670_v54 = vpack.c.bf16 %v187_v48, %v183_v47  ;;  %v186_v56 = vld [vmem:[#allocation2 + $0x3b0] sm:$0xff]  ;;  %v195_v58 = vld [vmem:[#allocation2 + $0x3f8] sm:$0xff]  ;;  %v612_v59 = vpack.c.bf16 %v192_v52, %v188_v51  ;;  %v61_v0 = vld [vmem:[%s883_s1] sm:$0xff] }
  0x51   :  { %653 = vmatpush1.bf16.msra.mxu1 %v652_v6  ;;  %v672_v60 = vpack.c.bf16 %v186_v56, %v182_v55  ;;  %v674_v61 = vpack.c.bf16 %v195_v58, %v191_v57  ;;  %v190_v62 = vld [vmem:[#allocation2 + $0x3d0] sm:$0xff]  ;;  %v385_v3 = vld [vmem:[#allocation4 + $0x8] sm:$0xff]  ;;  %v387_v7 = vld [vmem:[#allocation4 + $0x18] sm:$0xff] }
  0x52   :  { %655 = vmatprep.subr.bf16.mxu1 %v654_v8  ;;  %v194_v63 = vld [vmem:[#allocation2 + $0x3f0] sm:$0xff]  ;;  %v388_v9 = vld [vmem:[#allocation4 + $0x20] sm:$0xff]  ;;  %v389_v10 = vld [vmem:[#allocation4 + $0x28] sm:$0xff] }
  0x53   :  { %593 = vmatpush1.bf16.msra.mxu0 %v592_v1  ;;  %v676_v1 = vpack.c.bf16 %v194_v63, %v190_v62  ;;  %v386_v6 = vld [vmem:[#allocation4 + $0x10] sm:$0xff]  ;;  %v685_v11 = vpack.c.bf16 %v389_v10, %v388_v9  ;;  %v392_v15 = vld [vmem:[#allocation4 + $0x40] sm:$0xff]  ;;  %v393_v16 = vld [vmem:[#allocation4 + $0x48] sm:$0xff] }
  0x54   :  { %595 = vmatprep.subr.bf16.mxu0 %v594_v2  ;;  %v384_v2 = vld [vmem:[#allocation4] sm:$0xff]  ;;  %v682_v8 = vpack.c.bf16 %v387_v7, %v386_v6  ;;  %v390_v12 = vld [vmem:[#allocation4 + $0x30] sm:$0xff]  ;;  %v691_v17 = vpack.c.bf16 %v393_v16, %v392_v15  ;;  %v395_v19 = vld [vmem:[#allocation4 + $0x58] sm:$0xff] }
  0x55   :  { %657 = vmatpush1.bf16.msra.mxu1 %v656_v18  ;;  %v679_v4 = vpack.c.bf16 %v385_v3, %v384_v2  ;;  %v394_v18 = vld [vmem:[#allocation4 + $0x50] sm:$0xff]  ;;  %v396_v21 = vld [vmem:[#allocation4 + $0x60] sm:$0xff]  ;;  %v397_v22 = vld [vmem:[#allocation4 + $0x68] sm:$0xff] }
  0x56   :  { %659 = vmatprep.subr.bf16.mxu1 %v658_v20  ;;  %v694_v20 = vpack.c.bf16 %v395_v19, %v394_v18  ;;  %v697_v24 = vpack.c.bf16 %v397_v22, %v396_v21  ;;  %v196_v31 = vld [vmem:[%s886_s4] sm:$0xf] }
  0x57   :  { %597 = vmatpush1.bf16.msra.mxu0 %v596_v13  ;;  %v391_v13 = vld [vmem:[#allocation4 + $0x38] sm:$0xff]  ;;  %v213_v41 = vrot.slane %v196_v31, %v212_v35  ;;  %v209_v47 = vrot.slane %v196_v31, %v208_v43  ;;  %v63_v56 = vld [vmem:[%s884_s2] sm:$0xff] }
  0x58   :  { %599 = vmatprep.subr.bf16.mxu0 %v598_v14  ;;  %v688_v14 = vpack.c.bf16 %v391_v13, %v390_v12  ;;  %v497_v2 = vld [vmem:[%s888_s6] ss:$0 sm:$0xff] }
  0x59   :  { %661 = vmatpush1.bf16.msra.mxu1 %v660_v30  ;;  %v200_v30 = vsub.s32 0, %v199_v29 }
  0x5a   :  { %663 = vmatprep.subr.bf16.mxu1 %v662_v32  ;;  %v204_v32 = vsub.s32 1, %v199_v29 }
  0x5b   :  { %601 = vmatpush1.bf16.msra.mxu0 %v600_v25  ;;  %v398_v25 = vld [vmem:[#allocation4 + $0x70] sm:$0xff]  ;;  %v201_v33 = vrot.slane %v196_v31, %v200_v30 }
  0x5c   :  { %603 = vmatprep.subr.bf16.mxu0 %v602_v26  ;;  %v399_v26 = vld [vmem:[#allocation4 + $0x78] sm:$0xff]  ;;  %v205_v34 = vrot.slane %v196_v31, %v204_v32 }
  0x5d   :  { %665 = vmatpush1.bf16.msra.mxu1 %v664_v42  ;;  %v700_v27 = vpack.c.bf16 %v399_v26, %v398_v25 }
  0x5e   :  { %667 = vmatprep.subr.bf16.mxu1 %v666_v44 }
  0x5f   :  { %605 = vmatpush1.bf16.msra.mxu0 %v604_v37 }
  0x60   :  { %607 = vmatprep.subr.bf16.mxu0 %v606_v38 }
  0x61   :  { %669 = vmatpush1.bf16.msra.mxu1 %v668_v53 }
  0x62   :  { %671 = vmatprep.subr.bf16.mxu1 %v670_v54 }
  0x63   :  { %609 = vmatpush1.bf16.msra.mxu0 %v608_v49 }
  0x64   :  { %611 = vmatprep.subr.bf16.mxu0 %v610_v50 }
  0x65   :  { %673 = vmatpush1.bf16.msra.mxu1 %v672_v60 }
  0x66   :  { %675 = vmatprep.subr.bf16.mxu1 %v674_v61 }
  0x67   :  { %613 = vmatpush1.bf16.msra.mxu0 %v612_v59 }
  0x68   :  { %678 = vmatprep.subr.bf16.mxu0 %v781_v5 }
  0x69   :  { %677 = vmatpush1.bf16.msra.mxu1 %v676_v1 }
  0x6a   :  { %283 = vmatmul.mubr.f32.vlgmr.msra.gmra.mrb[0].mxu0 %v61_v0 }
  0x6b   :  { %680 = vmatpush3.bf16.msra.mxu0 %v679_v4  ;;  %547 = vmatprep.mubr.msk.f32.mxu0 %vm782_vm0, %v783_v23 }
  0x6c   :  { %354 = vmatmul.mubr.f32.vlgmr.msra.gmra.mrb[0].mxu1 %v61_v0  ;;  %681 = vmatprep.subr.bf16.mxu0 %v781_v5 }
  0x6f   :  { %683 = vmatpush3.bf16.msra.mxu0 %v682_v8 }
  0x70   :  { %684 = vmatprep.subr.bf16.mxu0 %v781_v5 }
  0x73   :  { %686 = vmatpush3.bf16.msra.mxu0 %v685_v11 }
  0x74   :  { %687 = vmatprep.subr.bf16.mxu0 %v781_v5 }
  0x77   :  { %689 = vmatpush3.bf16.msra.mxu0 %v688_v14 }
  0x78   :  { %690 = vmatprep.subr.bf16.mxu0 %v781_v5 }
  0x7b   :  { %692 = vmatpush3.bf16.msra.mxu0 %v691_v17 }
  0x7c   :  { %693 = vmatprep.subr.bf16.mxu0 %v781_v5 }
  0x7f   :  { %695 = vmatpush3.bf16.msra.mxu0 %v694_v20 }
  0x80   :  { %696 = vmatprep.subr.bf16.mxu0 %v781_v5 }
  0x83   :  { %698 = vmatpush3.bf16.msra.mxu0 %v697_v24 }
  0x84   :  { %699 = vmatprep.subr.bf16.mxu0 %v781_v5 }
  0x87   :  { %701 = vmatpush3.bf16.msra.mxu0 %v700_v27 }
 0x13d   :  { %v284_v36 = vpop.f32.mrb[0].mxu0 }
 0x13e   :  { %v285_v37 = vadd.f32 %v284_v36, %v201_v33  ;;  %v286_v38 = vpop.f32.mrb[1].mxu0 }
 0x13f   :  { %v287_v39 = vadd.f32 %v286_v38, %v205_v34  ;;  %v355_v44 = vpop.f32.mrb[0].mxu1 }
 0x140   :  { %v494_v40 = vmul.f32 -1.442695, %v285_v37  ;;  %v357_v45 = vpop.f32.mrb[1].mxu1  ;;  %v356_v49 = vadd.f32 %v355_v44, %v209_v47 }
 0x141   :  { %v495_v42 = vmul.f32 -1.442695, %v287_v39  ;;  %v358_v46 = vadd.f32 %v357_v45, %v213_v41 }
 0x142   :  { %711 = vpow2.f32 %v494_v40 }
 0x143   :  { %713 = vpow2.f32 %v495_v42  ;;  %v496_v48 = vmul.f32 -1.442695, %v358_v46 }
 0x145   :  { %715 = vpow2.f32 %v496_v48 }
 0x146   :  { %717 = vtanh.f32 %v356_v49 }
 0x14c   :  { %v712_v50 = vpop.eup %711 }
 0x14d   :  { %v714_v51 = vpop.eup %713  ;;  %v363_v52 = vadd.f32 1.0, %v712_v50 }
 0x14e   :  { %v369_v53 = vadd.f32 1.0, %v714_v51 }
 0x14f   :  { %719 = vrcp.f32 %v363_v52  ;;  %v716_v54 = vpop.eup %715 }
 0x150   :  { %721 = vrcp.f32 %v369_v53  ;;  %v718_v55 = vpop.eup %717  ;;  %v376_v58 = vadd.f32 1.0, %v716_v54 }
 0x152   :  { %723 = vrcp.f32 %v376_v58 }
 0x159   :  { %v720_v57 = vpop.eup %719 }
 0x15a   :  { %v722_v59 = vpop.eup %721  ;;  %v380_v60 = vmul.f32 %v720_v57, %v718_v55 }
 0x15b   :  { %v379_v61 = vmul.f32 %v722_v59, %v63_v56 }
 0x15c   :  { %v724_v63 = vpop.eup %723 }
 0x15d   :  { %v381_v62 = vadd.f32 %v380_v60, %v379_v61 }
 0x15f   :  { %725 = vtanh.f32 %v381_v62  ;;  %479 = vst [vmem:[%s891_s9] sm:$0xff] %v381_v62 }
 0x169   :  { %v726_v0 = vpop.eup %725 }
 0x16a   :  { %v383_v1 = vmul.f32 %v726_v0, %v724_v63 }
 0x16c   :  { %548 = vmatmul.mubr.f32.vlgmr.msra.gmra.mrb[2].mxu0 %v383_v1  ;;  %478 = vst [vmem:[%s890_s8] sm:$0xff] %v383_v1 }
 0x23f   :  { %v473_v3 = vpop.f32.mrb[2].mxu0 }
 0x240   :  { %v474_v4 = vadd.f32 %v497_v2, %v473_v3  ;;  %v549_v5 = vpop.f32.mrb[3].mxu0 }
 0x242   :  { %477 = vst [vmem:[%s889_s7] sm:$0xff] %v474_v4 }
 0x243   :  { %492 = vsyncpa [#allocation3], 1 }
 0x244   :  { %493 = vsyncpa [#allocation5], 1 }

</bundles_post_ra>
